<compile_context>
chip_gen: v7x
topology: tpu7x:2x2x1
jax: 0.10.0
libtpu: 0.0.40
codegen_flags: <defaults>
</compile_context>

<pallas_src>
import math
from functools import partial

import jax
import jax.numpy as jnp
from jax.experimental import pallas as pl
from jax.experimental.pallas import tpu as pltpu


def _round_up(a, b):
    return (a + b - 1) // b * b


def lm_layer_kernel(x_ref, we_ref, p_ref, wh_ref, o_ref, h_ref, *, n_strips, strip):
    # x_ref:  (tm, D)   bf16 activation row tile
    # we_ref: (D, D)    bf16 embed weight (in, out), grid-invariant
    # p_ref:  (3, D)    f32 packed [embed_bias; ln_gamma; ln_beta]
    # wh_ref: (D, tn)   bf16 head-weight vocab tile (streamed)
    # o_ref:  (tm, tn)  bf16 output tile (lane-dense stores)
    # h_ref:  (tm, D)   bf16 VMEM scratch: GELU+LN hidden, reused across vocab tiles
    j = pl.program_id(2)

    @pl.when(j == 0)
    def _():
        params = p_ref[...]
        be = params[0:1, :]
        gamma = params[1:2, :]
        beta = params[2:3, :]
        inv_sqrt2 = 1.0 / math.sqrt(2.0)

        def do_strip(r0):
            # embed: (strip, D) @ (D, D) on the MXU, bf16 in / f32 accumulate.
            h = jnp.dot(x_ref[pl.ds(r0, strip), :], we_ref[...],
                        preferred_element_type=jnp.float32)
            h = h + be
            # exact (erf) GELU — matches torch.nn.functional.gelu default.
            h = 0.5 * h * (1.0 + jax.lax.erf(h * inv_sqrt2))
            # LayerNorm over features, eps = 1e-5 (PyTorch default).
            # Padded rows also flow through this; rsqrt(var+eps) stays finite
            # and the padding is sliced off in the wrapper, so it is benign.
            mean = jnp.mean(h, axis=-1, keepdims=True)
            c = h - mean
            var = jnp.mean(c * c, axis=-1, keepdims=True)
            h = c * jax.lax.rsqrt(var + 1e-5)
            h = h * gamma + beta
            h_ref[pl.ds(r0, strip), :] = h.astype(h_ref.dtype)

        if n_strips == 1:
            do_strip(0)
        else:
            def body(s, carry):
                do_strip(pl.multiple_of(s * strip, strip))
                return carry
            jax.lax.fori_loop(0, n_strips, body, 0)

    # head: (tm, D) @ (D, tn) per vocab tile — pure MXU in the inner loop.
    o_ref[...] = jnp.dot(
        h_ref[...], wh_ref[...], preferred_element_type=jnp.float32
    ).astype(o_ref.dtype)


def lm_layer(x, w_embed, b_embed, gamma, beta, w_head, *, tm=None, tn=None):
    """x: (..., n_embd) f32  ->  logits (..., n_vocab) f32."""
    *lead, d = x.shape
    v = w_head.shape[1]
    m = 1
    for s in lead:
        m *= s
    x2 = x.reshape(m, d)

    # --- per-generation defaults & VMEM budget -------------------------------
    try:
        cap = int(pltpu.get_tpu_info().vmem_capacity_bytes)
    except Exception:
        cap = 64 * 1024 * 1024  # conservative (v7x per-TC VMEM)
    try:
        kind = jax.devices()[0].device_kind.lower()
    except Exception:
        kind = ""
    is_v5 = "v5" in kind

    if tm is None:
        # v5e crossover ~240 FLOP/byte -> tm=256 is already MXU-bound.
        # v6e/v7x need ~620-650 FLOP per streamed head-weight byte -> tm=512.
        tm = 256 if is_v5 else 512
    if tn is None:
        # 128 MiB VMEM (v5e/v6e) -> tn=1024 amortizes per-step overhead;
        # v7x (64 MiB) stays at 512.
        tn = 1024 if (is_v5 or cap >= 96 * 1024 * 1024) else 512

    # Clamp for tiny inputs: tm multiple of 16 (full bf16 sublane pack), tn of 128.
    tm = max(16, min(tm, _round_up(m, 16)))
    tn = max(128, min(tn, _round_up(v, 128)))

    # --- fit the tile footprint into VMEM ------------------------------------
    def footprint(tm_, tn_, whbuf_):
        strip_ = math.gcd(tm_, 128)
        return (2 * tm_ * d * 2          # x row tile (bf16, double-buffered)
                + whbuf_ * d * tn_ * 2   # head-weight vocab tiles (bf16)
                + 2 * tm_ * tn_ * 2      # output tile (bf16, double-buffered)
                + d * d * 2              # embed weight (bf16, single-buffered)
                + 3 * d * 4              # packed bias/gamma/beta (f32)
                + tm_ * d * 2            # hidden scratch (bf16)
                + 3 * strip_ * d * 4)    # live f32 GELU/LN temporaries per strip

    whbuf = 3  # deeper pipelining on the head-weight stream (j==0 step is long)
    budget = int(cap * 0.8)
    while footprint(tm, tn, whbuf) > budget:
        if whbuf > 2:
            whbuf = 2
        elif tn > 128:
            tn = max(128, _round_up(tn // 2, 128))
        elif tm > 256:
            tm = max(256, _round_up(tm // 2, 16))
        else:
            break
    # TODO(synk): for D >= ~2048 on v7x the resident DxD embed weight should be
    # streamed in K-tiles (memory_space=pl.ANY + pltpu.emit_pipeline) instead of
    # held in VMEM; not needed at this model's n_embd.

    strip = math.gcd(tm, 128)
    n_strips = tm // strip

    # --- grid / padding -------------------------------------------------------
    mp = _round_up(m, tm)
    n_row_tiles = mp // tm
    nj_total = _round_up(v, tn) // tn
    # v7x megacore for decode-style shapes: only one row tile but several vocab
    # tiles -> split vocab in half on a leading parallel axis so both cores work
    # (each core recomputes its own hidden tile at inner index 0).
    nsplit = 2 if (n_row_tiles < 2 and nj_total >= 2) else 1
    vp = _round_up(v, nsplit * tn)
    nj = vp // (nsplit * tn)

    if mp != m:
        x2 = jnp.pad(x2, ((0, mp - m), (0, 0)))
    wh = w_head if vp == v else jnp.pad(w_head, ((0, 0), (0, vp - v)))

    # bf16 MXU operands; all GELU/LN math stays f32 inside the kernel.
    x_bf = x2.astype(jnp.bfloat16)
    we_bf = w_embed.astype(jnp.bfloat16)
    wh_bf = wh.astype(jnp.bfloat16)
    params = jnp.concatenate(
        [b_embed.reshape(1, d), gamma.reshape(1, d), beta.reshape(1, d)], axis=0
    ).astype(jnp.float32)

    grid = (nsplit, n_row_tiles, nj)
    est = footprint(tm, tn, whbuf)
    vmem_limit = min(int(cap * 0.9), max(32 * 1024 * 1024, int(1.3 * est)))

    kernel = partial(lm_layer_kernel, n_strips=n_strips, strip=strip)

    def spec(shape, index_map, buffers, use_buffered):
        if use_buffered and buffers is not None and hasattr(pl, "Buffered"):
            try:
                return pl.BlockSpec(shape, index_map,
                                    pipeline_mode=pl.Buffered(buffers))
            except TypeError:
                pass
        return pl.BlockSpec(shape, index_map)

    def build(use_buffered):
        return pl.pallas_call(
            kernel,
            out_shape=jax.ShapeDtypeStruct((mp, vp), jnp.bfloat16),
            grid_spec=pltpu.PrefetchScalarGridSpec(
                num_scalar_prefetch=0,
                grid=grid,
                in_specs=[
                    # x row tile (default double-buffered)
                    spec((tm, d), lambda s, i, j: (i, 0), None, use_buffered),
                    # embed weight: grid-invariant -> single-buffered
                    spec((d, d), lambda s, i, j: (0, 0), 1, use_buffered),
                    # packed bias/gamma/beta: grid-invariant -> single-buffered
                    spec((3, d), lambda s, i, j: (0, 0), 1, use_buffered),
                    # head-weight vocab tile: streamed, deeper pipelining
                    spec((d, tn), lambda s, i, j: (0, s * nj + j), whbuf,
                         use_buffered),
                ],
                out_specs=pl.BlockSpec((tm, tn), lambda s, i, j: (i, s * nj + j)),
                scratch_shapes=[pltpu.VMEM((tm, d), jnp.bfloat16)],
            ),
            compiler_params=pltpu.CompilerParams(
                dimension_semantics=("parallel", "parallel", "arbitrary"),
                vmem_limit_bytes=vmem_limit,
            ),
        )

    try:
        out = build(True)(x_bf, we_bf, params, wh_bf)
    except Exception:
        # Fallback: identical kernel without explicit pipeline_mode control
        # (older JAX versions that don't accept pl.Buffered on BlockSpec).
        out = build(False)(x_bf, we_bf, params, wh_bf)

    out = out[:m, :v].astype(jnp.float32)
    return out.reshape(*lead, v)


def _reference(x, w_embed, b_embed, gamma, beta, w_head):
    h = x @ w_embed + b_embed
    h = 0.5 * h * (1.0 + jax.lax.erf(h / jnp.sqrt(2.0)))
    mean = jnp.mean(h, axis=-1, keepdims=True)
    var = jnp.mean((h - mean) ** 2, axis=-1, keepdims=True)
    h = (h - mean) / jnp.sqrt(var + 1e-5) * gamma + beta
    return h @ w_head


if __name__ == "__main__":
    batch, seq, n_embd, n_vocab = 2, 8, 32, 64

    key = jax.random.PRNGKey(0)
    kx, kwe, kbe, kwh = jax.random.split(key, 4)

    # Deterministic synthetic parameters (PyTorch-like scale for Linear layers).
    x = jax.random.normal(kx, (batch, seq, n_embd), dtype=jnp.float32)
    bound_e = 1.0 / math.sqrt(n_embd)
    w_embed = jax.random.uniform(
        kwe, (n_embd, n_embd), minval=-bound_e, maxval=bound_e, dtype=jnp.float32
    )
    b_embed = jax.random.uniform(
        kbe, (n_embd,), minval=-bound_e, maxval=bound_e, dtype=jnp.float32
    )
    gamma = jnp.ones((n_embd,), dtype=jnp.float32)   # nn.LayerNorm default weight
    beta = jnp.zeros((n_embd,), dtype=jnp.float32)   # nn.LayerNorm default bias
    w_head = jax.random.uniform(
        kwh, (n_embd, n_vocab), minval=-bound_e, maxval=bound_e, dtype=jnp.float32
    )

    out = lm_layer(x, w_embed, b_embed, gamma, beta, w_head)
    out = jax.block_until_ready(out)

    ref = _reference(
        x.reshape(-1, n_embd), w_embed, b_embed, gamma, beta, w_head
    ).reshape(batch, seq, n_vocab)

    assert out.shape == (batch, seq, n_vocab)
    # bf16 MXU operands / bf16 logits with f32 accumulation -> loosened tolerance.
    assert jnp.allclose(out, ref, atol=5e-2, rtol=5e-2), "mismatch vs reference"

    print("KERNEL_OK")
</pallas_src>

<mosaic_0001>
module attributes {stable_mosaic.version = 11 : i64} {
  func.func @lm_layer_kernel(%arg0: i32, %arg1: i32, %arg2: i32, %arg3: memref<16x32xbf16, #tpu.memory_space<vmem>>, %arg4: memref<32x32xbf16, #tpu.memory_space<vmem>>, %arg5: memref<3x32xf32, #tpu.memory_space<vmem>>, %arg6: memref<32x128xbf16, #tpu.memory_space<vmem>>, %arg7: memref<16x128xbf16, #tpu.memory_space<vmem>>, %arg8: memref<16x32xbf16, #tpu.memory_space<vmem>>) attributes {dimension_semantics = [#tpu.dimension_semantics<parallel>, #tpu.dimension_semantics<parallel>, #tpu.dimension_semantics<arbitrary>], iteration_bounds = array<i64: 1, 1, 1>, scalar_prefetch = 0 : i64, scratch_operands = 1 : i64, tpu.core_type = #tpu.core_type<tc>, window_params = [{transform_indices = @transform_0, window_bounds = array<i64: 16, 32>}, {pipeline_mode = #tpu.pipeline_mode<synchronous>, transform_indices = @transform_1, window_bounds = array<i64: 32, 32>}, {pipeline_mode = #tpu.pipeline_mode<synchronous>, transform_indices = @transform_2, window_bounds = array<i64: 3, 32>}, {transform_indices = @transform_3, window_bounds = array<i64: 32, 128>}, {transform_indices = @transform_4, window_bounds = array<i64: 16, 128>}]} {
    %c0_i32 = arith.constant 0 : i32
    %0 = arith.cmpi eq, %arg2, %c0_i32 : i32
    %1 = arith.extui %0 : i1 to i32
    %c0_i32_0 = arith.constant 0 : i32
    %2 = arith.cmpi ne, %1, %c0_i32_0 : i32
    scf.if %2 {
      %c0_6 = arith.constant 0 : index
      %c0_7 = arith.constant 0 : index
      %8 = vector.load %arg5[%c0_6, %c0_7] : memref<3x32xf32, #tpu.memory_space<vmem>>, vector<3x32xf32>
      %9 = vector.extract_strided_slice %8 {offsets = [0, 0], sizes = [1, 32], strides = [1, 1]} : vector<3x32xf32> to vector<1x32xf32>
      %10 = vector.extract_strided_slice %8 {offsets = [1, 0], sizes = [1, 32], strides = [1, 1]} : vector<3x32xf32> to vector<1x32xf32>
      %11 = vector.extract_strided_slice %8 {offsets = [2, 0], sizes = [1, 32], strides = [1, 1]} : vector<3x32xf32> to vector<1x32xf32>
      %c0_8 = arith.constant 0 : index
      %c0_9 = arith.constant 0 : index
      %12 = vector.load %arg3[%c0_8, %c0_9] : memref<16x32xbf16, #tpu.memory_space<vmem>>, vector<16x32xbf16>
      %c0_10 = arith.constant 0 : index
      %c0_11 = arith.constant 0 : index
      %13 = vector.load %arg4[%c0_10, %c0_11] : memref<32x32xbf16, #tpu.memory_space<vmem>>, vector<32x32xbf16>
      %cst_12 = arith.constant dense<0.000000e+00> : vector<16x32xf32>
      %14 = tpu.matmul %12, %13, %cst_12 {dimension_numbers = #tpu.dot_dimension_numbers<[1], [0], [0], [1], [0, 0, 1, 1], [], []>} : vector<16x32xbf16>, vector<32x32xbf16>, vector<16x32xf32> -> vector<16x32xf32>
      %15 = vector.broadcast %9 : vector<1x32xf32> to vector<16x32xf32>
      %16 = arith.addf %14, %15 : vector<16x32xf32>
      %cst_13 = arith.constant 5.000000e-01 : f32
      %17 = vector.broadcast %cst_13 : f32 to vector<16x32xf32>
      %18 = arith.mulf %17, %16 : vector<16x32xf32>
      %cst_14 = arith.constant 0.707106769 : f32
      %19 = vector.broadcast %cst_14 : f32 to vector<16x32xf32>
      %20 = arith.mulf %16, %19 : vector<16x32xf32>
      %21 = math.erf %20 : vector<16x32xf32>
      %cst_15 = arith.constant 1.000000e+00 : f32
      %22 = vector.broadcast %cst_15 : f32 to vector<16x32xf32>
      %23 = arith.addf %22, %21 : vector<16x32xf32>
      %24 = arith.mulf %18, %23 : vector<16x32xf32>
      %cst_16 = arith.constant dense<0.000000e+00> : vector<16xf32>
      %25 = vector.multi_reduction <add>, %24, %cst_16 [1] : vector<16x32xf32> to vector<16xf32>
      %26 = vector.shape_cast %25 : vector<16xf32> to vector<16x1xf32>
      %cst_17 = arith.constant 3.200000e+01 : f32
      %27 = vector.broadcast %cst_17 : f32 to vector<16x1xf32>
      %28 = arith.divf %26, %27 : vector<16x1xf32>
      %29 = vector.broadcast %28 : vector<16x1xf32> to vector<16x32xf32>
      %30 = arith.subf %24, %29 : vector<16x32xf32>
      %31 = arith.mulf %30, %30 : vector<16x32xf32>
      %cst_18 = arith.constant dense<0.000000e+00> : vector<16xf32>
      %32 = vector.multi_reduction <add>, %31, %cst_18 [1] : vector<16x32xf32> to vector<16xf32>
      %33 = vector.shape_cast %32 : vector<16xf32> to vector<16x1xf32>
      %cst_19 = arith.constant 3.200000e+01 : f32
      %34 = vector.broadcast %cst_19 : f32 to vector<16x1xf32>
      %35 = arith.divf %33, %34 : vector<16x1xf32>
      %cst_20 = arith.constant 9.99999974E-6 : f32
      %36 = vector.broadcast %cst_20 : f32 to vector<16x1xf32>
      %37 = arith.addf %35, %36 : vector<16x1xf32>
      %38 = math.rsqrt %37 : vector<16x1xf32>
      %39 = vector.broadcast %38 : vector<16x1xf32> to vector<16x32xf32>
      %40 = arith.mulf %30, %39 : vector<16x32xf32>
      %41 = vector.broadcast %10 : vector<1x32xf32> to vector<16x32xf32>
      %42 = arith.mulf %40, %41 : vector<16x32xf32>
      %43 = vector.broadcast %11 : vector<1x32xf32> to vector<16x32xf32>
      %44 = arith.addf %42, %43 : vector<16x32xf32>
      %45 = arith.truncf %44 : vector<16x32xf32> to vector<16x32xbf16>
      %c0_21 = arith.constant 0 : index
      %c0_22 = arith.constant 0 : index
      %46 = vector.load %arg8[%c0_21, %c0_22] : memref<16x32xbf16, #tpu.memory_space<vmem>>, vector<16x32xbf16>
      tpu.vector_store %arg8[%c0_21, %c0_22], %45 {strides = array<i32>} : memref<16x32xbf16, #tpu.memory_space<vmem>>, vector<16x32xbf16>,
    } else {
    }
    %c0 = arith.constant 0 : index
    %c0_1 = arith.constant 0 : index
    %3 = vector.load %arg8[%c0, %c0_1] : memref<16x32xbf16, #tpu.memory_space<vmem>>, vector<16x32xbf16>
    %c0_2 = arith.constant 0 : index
    %c0_3 = arith.constant 0 : index
    %4 = vector.load %arg6[%c0_2, %c0_3] : memref<32x128xbf16, #tpu.memory_space<vmem>>, vector<32x128xbf16>
    %cst = arith.constant dense<0.000000e+00> : vector<16x128xf32>
    %5 = tpu.matmul %3, %4, %cst {dimension_numbers = #tpu.dot_dimension_numbers<[1], [0], [0], [1], [0, 0, 1, 1], [], []>} : vector<16x32xbf16>, vector<32x128xbf16>, vector<16x128xf32> -> vector<16x128xf32>
    %6 = arith.truncf %5 : vector<16x128xf32> to vector<16x128xbf16>
    %c0_4 = arith.constant 0 : index
    %c0_5 = arith.constant 0 : index
    %7 = vector.load %arg7[%c0_4, %c0_5] : memref<16x128xbf16, #tpu.memory_space<vmem>>, vector<16x128xbf16>
    tpu.vector_store %arg7[%c0_4, %c0_5], %6 {strides = array<i32>} : memref<16x128xbf16, #tpu.memory_space<vmem>>, vector<16x128xbf16>,
    return
  }
  func.func @transform_0(%arg0: i32, %arg1: i32, %arg2: i32) -> (i32, i32) {
    %c0_i32 = arith.constant 0 : i32
    %c0_i32_0 = arith.constant 0 : i32
    return %arg1, %c0_i32 : i32, i32
  }
  func.func @transform_1(%arg0: i32, %arg1: i32, %arg2: i32) -> (i32, i32) {
    %c0_i32 = arith.constant 0 : i32
    %c0_i32_0 = arith.constant 0 : i32
    %c0_i32_1 = arith.constant 0 : i32
    return %c0_i32, %c0_i32_0 : i32, i32
  }
  func.func @transform_2(%arg0: i32, %arg1: i32, %arg2: i32) -> (i32, i32) {
    %c0_i32 = arith.constant 0 : i32
    %c0_i32_0 = arith.constant 0 : i32
    %c0_i32_1 = arith.constant 0 : i32
    return %c0_i32, %c0_i32_0 : i32, i32
  }
  func.func @transform_3(%arg0: i32, %arg1: i32, %arg2: i32) -> (i32, i32) {
    %c1_i32 = arith.constant 1 : i32
    %0 = arith.muli %arg0, %c1_i32 : i32
    %1 = arith.addi %0, %arg2 : i32
    %c0_i32 = arith.constant 0 : i32
    %c0_i32_0 = arith.constant 0 : i32
    return %c0_i32, %1 : i32, i32
  }
  func.func @transform_4(%arg0: i32, %arg1: i32, %arg2: i32) -> (i32, i32) {
    %c1_i32 = arith.constant 1 : i32
    %0 = arith.muli %arg0, %c1_i32 : i32
    %1 = arith.addi %0, %arg2 : i32
    %c0_i32 = arith.constant 0 : i32
    return %arg1, %1 : i32, i32
  }
}

</mosaic_0001>

<bundles_post_ra>
// kernel: tpu_custom_call.1
= control target key start
LH: loop header
LB: loop body
LE: loop exit
PB: predicated region body
PF: predicated region fallthrough
CT: control target
= control target key end

     0   :  { %9 = vsyncpa [#allocation4], 0  ;;  %s549_s0 = inlined_call_operand.hbm [shape: bf16[16,32], index: 0, kind: input, shape index: {}]   ;;  %s550_s1 = inlined_call_operand.hbm [shape: bf16[32,32], index: 1, kind: input, shape index: {}]   ;;  %s551_s2 = inlined_call_operand.vmem [shape: f32[3,32], index: 2, kind: input, shape index: {}]   ;;  %s552_s3 = inlined_call_operand.hbm [shape: bf16[32,128], index: 3, kind: input, shape index: {}]   ;;  %s553_s4 = inlined_call_operand.hbm [shape: bf16[16,128], index: 4, kind: output, shape index: {}]  }
   0x1   :  { %10 = vsyncpa [#allocation7], 0 }
   0x2   :  { %11 = vsyncpa [#allocation5], 0  ;;  %s439_s15 = smov [#allocation6]   ;;  %s440_s17 = smov [#allocation3]  }
   0x3   :  { %s29_s16 = sshll.u32 %s439_s15, 4  ;;  %s17_s18 = sshll.u32 %s440_s17, 4  ;;  %s30_s16 = int_to_ptr.vmem [resolvable:$true] %s29_s16  ;;  %s472_s18 = int_to_ptr.vmem [resolvable:$true] %s17_s18 }
   0x4   :  { %s345_s21 = scalar_lea.hbm %s550_s1, 256 }
   0x5   :  { %p346_p0 = scmp.ne.s32.totalorder %s550_s1, %s345_s21  ;;  %p349_p1 = scmp.lt.u32.totalorder %s345_s21, %s550_s1 }
   0x7   :  { %p351_p2 = pnand %p349_p1, %p346_p0 }
   0x9   :  { %354 = shalt.err (!%p351_p2)
}
   0xa   :  { %s355_s26 = scalar_lea.vmem %s30_s16, 256  ;;  %p360_p4 = scmp.lt.s32.totalorder %s30_s16, %s30_s16 }
   0xb   :  { %p356_p3 = scmp.ne.s32.totalorder %s30_s16, %s355_s26  ;;  %p361_p5 = scmp.lt.s32.totalorder %s355_s26, %s355_s26 }
   0xd   :  { %p362_p6 = por %p361_p5, %p360_p4 }
   0xf   :  { %p363_p7 = pnand %p362_p6, %p356_p3 }
  0x11   :  { %366 = shalt.err (!%p363_p7)
}
  0x12   :  { %s441_s27 = smov 64   ;;  %s442_s28 = smov 4  }
  0x13   :  { %35 = dma.hbm_to_vmem [thread:$0]  %s550_s1, 256, %s30_s16, [#allocation7], %s441_s27, %s441_s27, %s442_s28  }
  0x14   :  { %s367_s7 = scalar_lea.hbm %s549_s0, 128 }
  0x15   :  { %p368_p8 = scmp.ne.s32.totalorder %s549_s0, %s367_s7  ;;  %p371_p9 = scmp.lt.u32.totalorder %s367_s7, %s549_s0 }
  0x17   :  { %p373_p10 = pnand %p371_p9, %p368_p8 }
  0x19   :  { %376 = shalt.err (!%p373_p10)
}
  0x1a   :  { %s377_s12 = scalar_lea.vmem %s472_s18, 128  ;;  %p382_p12 = scmp.lt.s32.totalorder %s472_s18, %s472_s18 }
  0x1b   :  { %p378_p11 = scmp.ne.s32.totalorder %s472_s18, %s377_s12  ;;  %p383_p13 = scmp.lt.s32.totalorder %s377_s12, %s377_s12 }
  0x1d   :  { %p384_p0 = por %p383_p13, %p382_p12 }
  0x1f   :  { %p385_p1 = pnand %p384_p0, %p378_p11 }
  0x21   :  { %388 = shalt.err (!%p385_p1)
}
  0x22   :  { %23 = dma.hbm_to_vmem [thread:$0]  %s549_s0, 128, %s472_s18, [#allocation4], %s441_s27, %s441_s27, %s442_s28  }
  0x23   :  { %s443_s14 = smov [#allocation8]   ;;  %s389_s19 = scalar_lea.hbm %s552_s3, 256 }
  0x24   :  { %s46_s15 = sshll.u32 %s443_s14, 4  ;;  %p390_p2 = scmp.ne.s32.totalorder %s552_s3, %s389_s19  ;;  %s47_s15 = int_to_ptr.vmem [resolvable:$true] %s46_s15 }
  0x25   :  { %p393_p3 = scmp.lt.u32.totalorder %s389_s19, %s552_s3 }
  0x27   :  { %p395_p4 = pnand %p393_p3, %p390_p2 }
  0x29   :  { %398 = shalt.err (!%p395_p4)
}
  0x2a   :  { %s399_s24 = scalar_lea.vmem %s47_s15, 256  ;;  %p404_p6 = scmp.lt.s32.totalorder %s47_s15, %s47_s15 }
  0x2b   :  { %p400_p5 = scmp.ne.s32.totalorder %s47_s15, %s399_s24  ;;  %p405_p7 = scmp.lt.s32.totalorder %s399_s24, %s399_s24 }
  0x2d   :  { %p406_p8 = por %p405_p7, %p404_p6 }
  0x2f   :  { %p407_p9 = pnand %p406_p8, %p400_p5 }
  0x31   :  { %410 = shalt.err (!%p407_p9)
}
  0x32   :  { %52 = dma.hbm_to_vmem [thread:$0]  %s552_s3, 256, %s47_s15, [#allocation7], %s441_s27, %s441_s27, %s442_s28  }
  0x33   :  { %433 = dma.done.wait [#allocation4], 128  }
  0x34   :  { %434 = vsyncadd [#allocation4], 4294967168 }
  0x35   :  { %435 = dma.done.wait [#allocation7], 512  }
  0x36   :  { %436 = vsyncadd [#allocation7], 4294966784  ;;  %v444_v0 = vmov 0.0   ;;  %vm445_vm0 = vmmov 0   ;;  %v332_v1 = vld [vmem:[#allocation6] sm:$0xff]   ;;  %v333_v2 = vld [vmem:[#allocation6 + $0x8] sm:$0xff]   ;;  %v76_v4 = vlaneseq }
  0x37   :  { %308 = vmatprep.subr.bf16.mxu0 %v444_v0  ;;  %312 = vmatprep.mubr.msk.bf16.mxu0 %vm445_vm0, %v444_v0  ;;  %v334_v3 = vld [vmem:[#allocation3] sm:$0xff]   ;;  %vm97_vm1 = vcmask 261120   ;;  %v69_v7 = vld [vmem:[%s551_s2] sm:$0x7]  ;;  %s446_s2 = smov [#allocation9]  }
  0x38   :  { %316 = vmatprep.subr.bf16.mxu1 %v444_v0  ;;  %320 = vmatprep.mubr.msk.bf16.mxu1 %vm445_vm0, %v444_v0  ;;  %v77_v5 = vshrl.u32 %v76_v4, 7  ;;  %v335_v37 = vld [vmem:[#allocation8] sm:$0xff]   ;;  %v336_v38 = vld [vmem:[#allocation8 + $0x8] sm:$0xff]   ;;  %s273_s26 = sshll.u32 %s446_s2, 4  ;;  %s274_s26 = int_to_ptr.vmem [resolvable:$true] %s273_s26 }
  0x39   :  { %309 = vmatpush3.bf16.msra.mxu0 %v332_v1  ;;  %317 = vmatpush3.bf16.msra.mxu1 %v335_v37  ;;  %s411_s29 = scalar_lea.vmem %s274_s26, 128  ;;  %p416_p11 = scmp.lt.s32.totalorder %s274_s26, %s274_s26 }
  0x3a   :  { %310 = vmatprep.subr.bf16.mxu0 %v444_v0  ;;  %v78_v6 = vsub.s32 0, %v77_v5  ;;  %318 = vmatprep.subr.bf16.mxu1 %v444_v0  ;;  %v181_v45 = vsub.s32 1, %v77_v5  ;;  %v187_v48 = vsub.s32 2, %v77_v5  ;;  %p412_p10 = scmp.ne.s32.totalorder %s274_s26, %s411_s29  ;;  %p417_p12 = scmp.lt.s32.totalorder %s411_s29, %s411_s29 }
  0x3c   :  { %v79_v8 = vrot.slane %v69_v7, %v78_v6  ;;  %v182_v47 = vrot.slane %v69_v7, %v181_v45  ;;  %v188_v51 = vrot.slane %v69_v7, %v187_v48  ;;  %p418_p13 = por %p417_p12, %p416_p11 }
  0x3d   :  { %311 = vmatpush3.bf16.msra.mxu0 %v333_v2  ;;  %319 = vmatpush3.bf16.msra.mxu1 %v336_v38 }
  0x3e   :  { %p419_p0 = pnand %p418_p13, %p412_p10 }
  0x40   :  { %313 = vmatmul.mubr.msk.bf16.vlgmr.msra.gmra.mrb[0].mxu0 %vm97_vm1, %v334_v3 }
 0x113   :  { %v135_v9 = vpop.f32.mrb[0].mxu0 }
 0x114   :  { %v136_v10 = vadd.f32 %v135_v9, %v79_v8  ;;  %v314_v11 = vpop.f32.mrb[1].mxu0 }
 0x115   :  { %v138_v12 = vpop.f32.mrb[2].mxu0 }
 0x116   :  { %v144_v13 = vmul.f32 0.70710677, %v136_v10  ;;  %v139_v14 = vadd.f32 %v138_v12, %v79_v8  ;;  %v315_v15 = vpop.f32.mrb[3].mxu0  ;;  %v142_v18 = vmul.f32 0.5, %v136_v10 }
 0x118   :  { %337 = verf.f32 %v144_v13  ;;  %v145_v16 = vmul.f32 0.70710677, %v139_v14  ;;  %v143_v21 = vmul.f32 0.5, %v139_v14 }
 0x11a   :  { %339 = verf.f32 %v145_v16 }
 0x122   :  { %v338_v17 = vpop.eup %337 }
 0x123   :  { %v148_v19 = vadd.f32 1.0, %v338_v17 }
 0x124   :  { %v340_v20 = vpop.eup %339 }
 0x125   :  { %v150_v22 = vmul.f32 %v148_v19, %v142_v18  ;;  %v149_v23 = vadd.f32 1.0, %v340_v20 }
 0x127   :  { %v152_v24 = vsel %vm97_vm1, %v150_v22, 0.0  ;;  %v151_v25 = vmul.f32 %v149_v23, %v143_v21 }
 0x128   :  { %153 = vadd.xlane.f32.xlu0 %v152_v24 }
 0x129   :  { %v155_v26 = vsel %vm97_vm1, %v151_v25, 0.0 }
 0x12c   :  { %156 = vadd.xlane.f32.xlu0 %v155_v26 }
 0x1b5   :  { %v154_v27 = vpop.xlane.xlu0 %153 }
 0x1b6   :  { %v159_v28 = vmul.f32 0.03125, %v154_v27 }
 0x1b8   :  { %v161_v29 = vsub.f32 %v150_v22, %v159_v28 }
 0x1b9   :  { %v157_v30 = vpop.xlane.xlu0 %156 }
 0x1ba   :  { %v160_v31 = vmul.f32 0.03125, %v157_v30  ;;  %v163_v32 = vmul.f32 %v161_v29, %v161_v29 }
 0x1bc   :  { %v162_v33 = vsub.f32 %v151_v25, %v160_v31  ;;  %v165_v34 = vsel %vm97_vm1, %v163_v32, 0.0 }
 0x1bd   :  { %166 = vadd.xlane.f32.xlu1 %v165_v34 }
 0x1be   :  { %v164_v35 = vmul.f32 %v162_v33, %v162_v33 }
 0x1c0   :  { %v168_v36 = vsel %vm97_vm1, %v164_v35, 0.0 }
 0x1c1   :  { %169 = vadd.xlane.f32.xlu1 %v168_v36 }
 0x24a   :  { %v167_v39 = vpop.xlane.xlu1 %166 }
 0x24b   :  { %v171_v40 = vmul.f32 0.03125, %v167_v39 }
 0x24d   :  { %v173_v41 = vadd.f32 1e-05, %v171_v40 }
 0x24e   :  { %v170_v42 = vpop.xlane.xlu1 %169 }
 0x24f   :  { %341 = vrsqrt.f32 %v173_v41  ;;  %v172_v43 = vmul.f32 0.03125, %v170_v42 }
 0x251   :  { %v174_v44 = vadd.f32 1e-05, %v172_v43 }
 0x253   :  { %343 = vrsqrt.f32 %v174_v44 }
 0x259   :  { %v342_v46 = vpop.eup %341 }
 0x25a   :  { %v177_v49 = vmul.f32 %v342_v46, %v161_v29 }
 0x25c   :  { %v183_v52 = vmul.f32 %v182_v47, %v177_v49 }
 0x25d   :  { %v344_v50 = vpop.eup %343 }
 0x25e   :  { %v178_v53 = vmul.f32 %v344_v50, %v162_v33  ;;  %v189_v55 = vadd.f32 %v188_v51, %v183_v52 }
 0x260   :  { %v184_v54 = vmul.f32 %v182_v47, %v178_v53 }
 0x262   :  { %v190_v56 = vadd.f32 %v188_v51, %v184_v54 }
 0x264   :  { %v191_v57 = vpack.c.bf16 %v190_v56, %v189_v55 }
 0x266   :  { %192 = vst.msk [vmem:[#allocation2] sm:$0xff] %vm97_vm1, %v191_v57 }
 0x26d   :  { %v193_v58 = vld [vmem:[#allocation2] sm:$0xff] }
 0x26e   :  { %321 = vmatmul.mubr.msk.bf16.vlgmr.msra.gmra.mrb[0].mxu1 %vm97_vm1, %v193_v58 }
 0x341   :  { %v248_v59 = vpop.f32.mrb[0].mxu1 }
 0x342   :  { %v322_v60 = vpop.f32.mrb[1].mxu1 }
 0x343   :  { %v251_v61 = vpop.f32.mrb[2].mxu1 }
 0x344   :  { %v300_v62 = vpack.c.bf16 %v251_v61, %v248_v59  ;;  %v323_v63 = vpop.f32.mrb[3].mxu1 }
 0x346   :  { %301 = vst [vmem:[#allocation9] sm:$0xff] %v300_v62  }
 0x347   :  { %422 = shalt.err (!%p419_p0)
}
 0x348   :  { %s423_s6 = scalar_lea.hbm %s553_s4, 128 }
 0x349   :  { %p424_p1 = scmp.ne.s32.totalorder %s553_s4, %s423_s6  ;;  %p427_p2 = scmp.lt.u32.totalorder %s423_s6, %s553_s4 }
 0x34b   :  { %p429_p3 = pnand %p427_p2, %p424_p1 }
 0x34d   :  { %432 = shalt.err (!%p429_p3)
}
 0x34e   :  { %279 = dma.vmem_to_hbm [thread:$0]  %s274_s26, 128, %s553_s4, [#allocation5], %s441_s27, %s441_s27, %s442_s28  }
 0x34f   :  { %437 = dma.done.wait [#allocation5], 128  }
 0x350   :  { %438 = vsyncadd [#allocation5], 4294967168 }
 0x351   :  { %283 = vsyncpa [#allocation4], 1 }
 0x352   :  { %284 = vsyncpa [#allocation7], 1 }
 0x353   :  { %285 = vsyncpa [#allocation5], 1 }

</bundles_post_ra>
